<compile_context>
chip_gen: v5e
topology: v5e:2x2
jax: 0.10.0
libtpu: 0.0.40
codegen_flags: <defaults>
</compile_context>

<pallas_src>
import jax
import jax.numpy as jnp
from jax.experimental import pallas as pl
from jax.experimental.pallas import tpu as pltpu


def _round_up(x, m):
    return (x + m - 1) // m * m


def _cdiv(a, b):
    return (a + b - 1) // b


# ----------------------------- kernels ------------------------------------


def _dense1_ln_kernel(x_ref, w1_ref, b1_ref, g_ref, be_ref, hn_ref):
    # dense1 (f32 accumulation) -> ReLU -> LayerNorm (f32, eps=1e-5, biased var)
    h = jnp.dot(x_ref[...], w1_ref[...], preferred_element_type=jnp.float32)
    h = h + b1_ref[...]
    h = jnp.maximum(h, 0.0)
    mean = jnp.mean(h, axis=-1, keepdims=True)
    var = jnp.mean((h - mean) * (h - mean), axis=-1, keepdims=True)
    hn = (h - mean) * jax.lax.rsqrt(var + 1e-5)
    hn = hn * g_ref[...] + be_ref[...]
    hn_ref[...] = hn.astype(hn_ref.dtype)


def _dense2_kernel(hn_ref, w2_ref, b2_ref, o_ref):
    # Pure MXU matmul + bias for one (row tile, vocab tile); f32 accumulation.
    out = jnp.dot(hn_ref[...], w2_ref[...], preferred_element_type=jnp.float32)
    o_ref[...] = (out + b2_ref[...]).astype(o_ref.dtype)


# ----------------------------- wrapper -------------------------------------


def _vmem_capacity_bytes():
    try:
        return int(pltpu.get_tpu_info().vmem_capacity_bytes)
    except Exception:
        # Conservative default = smallest current-gen per-core VMEM (v7x).
        return 64 << 20


def _select_tiles(R, H, V, tm_req, tn_req, cbytes, obytes, budget):
    """Pick (n_row_tiles, tm, tn) for the dense2 grid.

    Few large row tiles (w2 is re-streamed once per row tile), balanced so
    padding waste is < 8 rows per tile; vocab tiles as large as the VMEM
    budget allows (lane-dense output stores, fewer grid steps).
    """
    n_rt = max(1, _cdiv(R, max(tm_req, 8)))
    tm = _round_up(_cdiv(R, n_rt), 8)
    tn = min(_round_up(max(tn_req, 128), 128), _round_up(V, 128))

    def est(tm_, tn_):
        # double-buffered hn tile + w2 tile + b2 tile + out tile
        return 2 * (tm_ * H * cbytes + H * tn_ * cbytes + tn_ * 4
                    + tm_ * tn_ * obytes)

    while est(tm, tn) > budget and tn > 256:
        tn = _round_up(max(256, tn // 2), 128)
    while est(tm, tn) > budget and tm > 8 and n_rt < R:
        n_rt += 1
        tm = _round_up(_cdiv(R, n_rt), 8)
    return n_rt, tm, tn, est(tm, tn)


def masklm_forward(X, pred_positions, params, *, tm=1024, tn=2048,
                   matmul_dtype=jnp.bfloat16, out_dtype=jnp.float32):
    """X: (B, S, H) f32; pred_positions: (B, P) i32 -> (B, P, vocab) logits."""
    w1, b1, gamma, beta, w2, b2 = params
    B, S, H = X.shape
    P = pred_positions.shape[1]
    V = w2.shape[1]
    R = B * P

    cdt = jnp.dtype(matmul_dtype)
    odt = jnp.dtype(out_dtype)
    cbytes = cdt.itemsize
    obytes = odt.itemsize

    vmem_cap = _vmem_capacity_bytes()
    budget = int(vmem_cap * 0.7)          # headroom for pipeline/internal use

    n_rt, tm_eff, tn_eff, est_b = _select_tiles(R, H, V, tm, tn, cbytes,
                                                obytes, budget)
    Rp = n_rt * tm_eff
    Vp = _round_up(V, tn_eff)

    # --- gather glue (same semantics as the torch fancy-indexing) ---
    batch_idx = jnp.repeat(jnp.arange(B, dtype=jnp.int32), P)
    pos_flat = pred_positions.reshape(-1).astype(jnp.int32)
    masked_X = X[batch_idx, pos_flat]                       # (R, H) f32

    if Rp != R:
        masked_X = jnp.pad(masked_X, ((0, Rp - R), (0, 0)))
    xc = masked_X.astype(cdt)                               # bf16 row stream

    w1c = w1.astype(cdt)
    w2p = w2 if Vp == V else jnp.pad(w2, ((0, 0), (0, Vp - V)))
    w2c = w2p.astype(cdt)
    b2p = b2 if Vp == V else jnp.pad(b2, ((0, Vp - V),))

    b1_2d = b1.reshape(1, H).astype(jnp.float32)
    g_2d = gamma.reshape(1, H).astype(jnp.float32)
    be_2d = beta.reshape(1, H).astype(jnp.float32)
    b2_2d = b2p.reshape(1, Vp).astype(jnp.float32)

    # ---------------- kernel A: dense1 + ReLU + LayerNorm ----------------
    est_a = (2 * (tm_eff * H * cbytes        # x tile
                  + tm_eff * H * cbytes)     # hn out tile
             + 2 * (H * H * cbytes + 3 * H * 4))  # resident w1/b1/gamma/beta
    vmem_limit_a = int(min(max(est_a * 1.5, 8 << 20), vmem_cap))

    hn = pl.pallas_call(
        _dense1_ln_kernel,
        out_shape=jax.ShapeDtypeStruct((Rp, H), cdt),
        grid_spec=pltpu.PrefetchScalarGridSpec(
            num_scalar_prefetch=0,
            grid=(n_rt,),
            in_specs=[
                pl.BlockSpec((tm_eff, H), lambda i: (i, 0)),   # masked rows
                pl.BlockSpec((H, H), lambda i: (0, 0)),        # w1 (resident)
                pl.BlockSpec((1, H), lambda i: (0, 0)),        # b1
                pl.BlockSpec((1, H), lambda i: (0, 0)),        # gamma
                pl.BlockSpec((1, H), lambda i: (0, 0)),        # beta
            ],
            out_specs=pl.BlockSpec((tm_eff, H), lambda i: (i, 0)),
        ),
        compiler_params=pltpu.CompilerParams(
            dimension_semantics=("parallel",),
            vmem_limit_bytes=vmem_limit_a),
    )(xc, w1c, b1_2d, g_2d, be_2d)

    # ---------------- kernel B: dense2 (rows x vocab, both parallel) -----
    vmem_limit_b = int(min(max(est_b * 1.4, 8 << 20), vmem_cap))

    out = pl.pallas_call(
        _dense2_kernel,
        out_shape=jax.ShapeDtypeStruct((Rp, Vp), odt),
        grid_spec=pltpu.PrefetchScalarGridSpec(
            num_scalar_prefetch=0,
            grid=(n_rt, Vp // tn_eff),
            in_specs=[
                pl.BlockSpec((tm_eff, H), lambda i, j: (i, 0)),    # hn rows
                pl.BlockSpec((H, tn_eff), lambda i, j: (0, j)),    # w2 tile
                pl.BlockSpec((1, tn_eff), lambda i, j: (0, j)),    # b2 tile
            ],
            out_specs=pl.BlockSpec((tm_eff, tn_eff), lambda i, j: (i, j)),
        ),
        compiler_params=pltpu.CompilerParams(
            # Both axes are independent -> v7x megacore may shard either one.
            dimension_semantics=("parallel", "parallel"),
            vmem_limit_bytes=vmem_limit_b),
    )(hn, w2c, b2_2d)

    return out[:R, :V].reshape(B, P, V)


# ----------------------------- reference / test ----------------------------


def init_params(key, num_hidden, vocab_size):
    k1, k2, k3, k4 = jax.random.split(key, 4)
    scale1 = 1.0 / jnp.sqrt(num_hidden)
    w1 = jax.random.uniform(k1, (num_hidden, num_hidden), jnp.float32, -scale1, scale1)
    b1 = jax.random.uniform(k2, (num_hidden,), jnp.float32, -scale1, scale1)
    gamma = jnp.ones((num_hidden,), jnp.float32)
    beta = jnp.zeros((num_hidden,), jnp.float32)
    w2 = jax.random.uniform(k3, (num_hidden, vocab_size), jnp.float32, -scale1, scale1)
    b2 = jax.random.uniform(k4, (vocab_size,), jnp.float32, -scale1, scale1)
    return (w1, b1, gamma, beta, w2, b2)


def masklm_reference(X, pred_positions, params):
    """Pure-JAX reference matching the torch forward."""
    w1, b1, gamma, beta, w2, b2 = params
    B = X.shape[0]
    P = pred_positions.shape[1]
    batch_idx = jnp.repeat(jnp.arange(B), P)
    masked_X = X[batch_idx, pred_positions.reshape(-1)].reshape(B, P, -1)
    h = jnp.maximum(masked_X @ w1 + b1, 0.0)
    mean = jnp.mean(h, axis=-1, keepdims=True)
    var = jnp.mean((h - mean) ** 2, axis=-1, keepdims=True)
    hn = (h - mean) / jnp.sqrt(var + 1e-5) * gamma + beta
    return hn @ w2 + b2


if __name__ == "__main__":
    # small shapes: batch=2, seq=16, hidden=32, vocab=128, num_pred=8
    B, S, H, V, P = 2, 16, 32, 128, 8

    key = jax.random.PRNGKey(0)
    kx, kp, kparam = jax.random.split(key, 3)

    X = jax.random.normal(kx, (B, S, H), dtype=jnp.float32)
    pred_positions = jax.random.randint(kp, (B, P), 0, S, dtype=jnp.int32)
    params = init_params(kparam, H, V)

    ref = masklm_reference(X, pred_positions, params)

    # f32-matmul path: tight numerical check of the kernel structure.
    out_f32 = jax.block_until_ready(
        masklm_forward(X, pred_positions, params, matmul_dtype=jnp.float32))
    assert out_f32.shape == (B, P, V)
    assert jnp.allclose(out_f32, ref, atol=1e-4, rtol=1e-4), "f32 mismatch vs reference"

    # bf16-matmul path (default on v5e/v6e/v7x): looser tol, since MXU operands
    # are bf16 (accumulation and LayerNorm stay f32).
    out_bf16 = jax.block_until_ready(masklm_forward(X, pred_positions, params))
    assert out_bf16.shape == (B, P, V)
    assert jnp.allclose(out_bf16, ref, atol=1e-1, rtol=5e-2), "bf16 mismatch vs reference"

    print("KERNEL_OK")
</pallas_src>

<mosaic_0001>
module attributes {stable_mosaic.version = 11 : i64} {
  func.func @_dense1_ln_kernel(%arg0: i32, %arg1: memref<16x32xf32, #tpu.memory_space<vmem>>, %arg2: memref<32x32xf32, #tpu.memory_space<vmem>>, %arg3: memref<1x32xf32, #tpu.memory_space<vmem>>, %arg4: memref<1x32xf32, #tpu.memory_space<vmem>>, %arg5: memref<1x32xf32, #tpu.memory_space<vmem>>, %arg6: memref<16x32xf32, #tpu.memory_space<vmem>>) attributes {dimension_semantics = [#tpu.dimension_semantics<parallel>], iteration_bounds = array<i64: 1>, scalar_prefetch = 0 : i64, scratch_operands = 0 : i64, tpu.core_type = #tpu.core_type<tc>, window_params = [{transform_indices = @transform_0, window_bounds = array<i64: 16, 32>}, {pipeline_mode = #tpu.pipeline_mode<synchronous>, transform_indices = @transform_1, window_bounds = array<i64: 32, 32>}, {pipeline_mode = #tpu.pipeline_mode<synchronous>, transform_indices = @transform_2, window_bounds = array<i64: 1, 32>}, {pipeline_mode = #tpu.pipeline_mode<synchronous>, transform_indices = @transform_3, window_bounds = array<i64: 1, 32>}, {pipeline_mode = #tpu.pipeline_mode<synchronous>, transform_indices = @transform_4, window_bounds = array<i64: 1, 32>}, {transform_indices = @transform_5, window_bounds = array<i64: 16, 32>}]} {
    %c0 = arith.constant 0 : index
    %c0_0 = arith.constant 0 : index
    %0 = vector.load %arg1[%c0, %c0_0] : memref<16x32xf32, #tpu.memory_space<vmem>>, vector<16x32xf32>
    %c0_1 = arith.constant 0 : index
    %c0_2 = arith.constant 0 : index
    %1 = vector.load %arg2[%c0_1, %c0_2] : memref<32x32xf32, #tpu.memory_space<vmem>>, vector<32x32xf32>
    %cst = arith.constant dense<0.000000e+00> : vector<16x32xf32>
    %2 = tpu.matmul %0, %1, %cst {dimension_numbers = #tpu.dot_dimension_numbers<[1], [0], [0], [1], [0, 0, 1, 1], [], []>} : vector<16x32xf32>, vector<32x32xf32>, vector<16x32xf32> -> vector<16x32xf32>
    %c0_3 = arith.constant 0 : index
    %c0_4 = arith.constant 0 : index
    %3 = vector.load %arg3[%c0_3, %c0_4] : memref<1x32xf32, #tpu.memory_space<vmem>>, vector<1x32xf32>
    %4 = vector.broadcast %3 : vector<1x32xf32> to vector<16x32xf32>
    %5 = arith.addf %2, %4 : vector<16x32xf32>
    %cst_5 = arith.constant 0.000000e+00 : f32
    %6 = vector.broadcast %cst_5 : f32 to vector<16x32xf32>
    %7 = arith.maximumf %5, %6 : vector<16x32xf32>
    %cst_6 = arith.constant dense<0.000000e+00> : vector<16xf32>
    %8 = vector.multi_reduction <add>, %7, %cst_6 [1] : vector<16x32xf32> to vector<16xf32>
    %9 = vector.shape_cast %8 : vector<16xf32> to vector<16x1xf32>
    %cst_7 = arith.constant 3.200000e+01 : f32
    %10 = vector.broadcast %cst_7 : f32 to vector<16x1xf32>
    %11 = arith.divf %9, %10 : vector<16x1xf32>
    %12 = vector.broadcast %11 : vector<16x1xf32> to vector<16x32xf32>
    %13 = arith.subf %7, %12 : vector<16x32xf32>
    %14 = vector.broadcast %11 : vector<16x1xf32> to vector<16x32xf32>
    %15 = arith.subf %7, %14 : vector<16x32xf32>
    %16 = arith.mulf %13, %15 : vector<16x32xf32>
    %cst_8 = arith.constant dense<0.000000e+00> : vector<16xf32>
    %17 = vector.multi_reduction <add>, %16, %cst_8 [1] : vector<16x32xf32> to vector<16xf32>
    %18 = vector.shape_cast %17 : vector<16xf32> to vector<16x1xf32>
    %cst_9 = arith.constant 3.200000e+01 : f32
    %19 = vector.broadcast %cst_9 : f32 to vector<16x1xf32>
    %20 = arith.divf %18, %19 : vector<16x1xf32>
    %21 = vector.broadcast %11 : vector<16x1xf32> to vector<16x32xf32>
    %22 = arith.subf %7, %21 : vector<16x32xf32>
    %cst_10 = arith.constant 9.99999974E-6 : f32
    %23 = vector.broadcast %cst_10 : f32 to vector<16x1xf32>
    %24 = arith.addf %20, %23 : vector<16x1xf32>
    %25 = math.rsqrt %24 : vector<16x1xf32>
    %26 = vector.broadcast %25 : vector<16x1xf32> to vector<16x32xf32>
    %27 = arith.mulf %22, %26 : vector<16x32xf32>
    %c0_11 = arith.constant 0 : index
    %c0_12 = arith.constant 0 : index
    %28 = vector.load %arg4[%c0_11, %c0_12] : memref<1x32xf32, #tpu.memory_space<vmem>>, vector<1x32xf32>
    %29 = vector.broadcast %28 : vector<1x32xf32> to vector<16x32xf32>
    %30 = arith.mulf %27, %29 : vector<16x32xf32>
    %c0_13 = arith.constant 0 : index
    %c0_14 = arith.constant 0 : index
    %31 = vector.load %arg5[%c0_13, %c0_14] : memref<1x32xf32, #tpu.memory_space<vmem>>, vector<1x32xf32>
    %32 = vector.broadcast %31 : vector<1x32xf32> to vector<16x32xf32>
    %33 = arith.addf %30, %32 : vector<16x32xf32>
    %c0_15 = arith.constant 0 : index
    %c0_16 = arith.constant 0 : index
    %34 = vector.load %arg6[%c0_15, %c0_16] : memref<16x32xf32, #tpu.memory_space<vmem>>, vector<16x32xf32>
    tpu.vector_store %arg6[%c0_15, %c0_16], %33 {strides = array<i32>} : memref<16x32xf32, #tpu.memory_space<vmem>>, vector<16x32xf32>,
    return
  }
  func.func @transform_0(%arg0: i32) -> (i32, i32) {
    %c0_i32 = arith.constant 0 : i32
    %c0_i32_0 = arith.constant 0 : i32
    return %arg0, %c0_i32 : i32, i32
  }
  func.func @transform_1(%arg0: i32) -> (i32, i32) {
    %c0_i32 = arith.constant 0 : i32
    %c0_i32_0 = arith.constant 0 : i32
    %c0_i32_1 = arith.constant 0 : i32
    return %c0_i32, %c0_i32_0 : i32, i32
  }
  func.func @transform_2(%arg0: i32) -> (i32, i32) {
    %c0_i32 = arith.constant 0 : i32
    %c0_i32_0 = arith.constant 0 : i32
    %c0_i32_1 = arith.constant 0 : i32
    return %c0_i32, %c0_i32_0 : i32, i32
  }
  func.func @transform_3(%arg0: i32) -> (i32, i32) {
    %c0_i32 = arith.constant 0 : i32
    %c0_i32_0 = arith.constant 0 : i32
    %c0_i32_1 = arith.constant 0 : i32
    return %c0_i32, %c0_i32_0 : i32, i32
  }
  func.func @transform_4(%arg0: i32) -> (i32, i32) {
    %c0_i32 = arith.constant 0 : i32
    %c0_i32_0 = arith.constant 0 : i32
    %c0_i32_1 = arith.constant 0 : i32
    return %c0_i32, %c0_i32_0 : i32, i32
  }
  func.func @transform_5(%arg0: i32) -> (i32, i32) {
    %c0_i32 = arith.constant 0 : i32
    %c0_i32_0 = arith.constant 0 : i32
    return %arg0, %c0_i32 : i32, i32
  }
}

</mosaic_0001>

<bundles_post_ra>
// kernel: tpu_custom_call.1
= control target key start
LH: loop header
LB: loop body
LE: loop exit
PB: predicated region body
PF: predicated region fallthrough
CT: control target
= control target key end

     0   :  { %10 = vsyncpa [#allocation3], 0  ;;  %s350_s0 = inlined_call_operand.hbm [shape: f32[16,32], index: 0, kind: input, shape index: {}]   ;;  %s351_s1 = inlined_call_operand.hbm [shape: f32[32,32], index: 1, kind: input, shape index: {}]   ;;  %s352_s2 = inlined_call_operand.vmem [shape: f32[1,32], index: 2, kind: input, shape index: {}]   ;;  %s353_s3 = inlined_call_operand.vmem [shape: f32[1,32], index: 3, kind: input, shape index: {}]   ;;  %s354_s4 = inlined_call_operand.vmem [shape: f32[1,32], index: 4, kind: input, shape index: {}]   ;;  %s355_s5 = inlined_call_operand.hbm [shape: f32[16,32], index: 5, kind: output, shape index: {}]  }
   0x1   :  { %11 = vsyncpa [#allocation6], 0 }
   0x2   :  { %12 = vsyncpa [#allocation4], 0  ;;  %s17_s20 = sshll.u32 %s350_s0, 4  ;;  %s279_s21 = smov [#allocation2]   ;;  %s18_s20 = int_to_ptr.hbm [resolvable:$true] %s17_s20 }
   0x3   :  { %s19_s22 = sshll.u32 %s279_s21, 4  ;;  %s30_s25 = sshll.u32 %s351_s1, 4  ;;  %s20_s22 = int_to_ptr.vmem [resolvable:$true] %s19_s22  ;;  %s31_s25 = int_to_ptr.hbm [resolvable:$true] %s30_s25 }
   0x4   :  { %s280_s26 = smov 128   ;;  %s281_s27 = smov 8  }
   0x5   :  { %25 = dma.hbm_to_vmem [thread:$0]  %s18_s20, 256, %s20_s22, [#allocation3], %s280_s26, %s280_s26, %s281_s27  }
   0x6   :  { %s282_s28 = smov [#allocation5]  }
   0x7   :  { %s32_s29 = sshll.u32 %s282_s28, 4  ;;  %s33_s29 = int_to_ptr.vmem [resolvable:$true] %s32_s29 }
   0x8   :  { %38 = dma.hbm_to_vmem [thread:$0]  %s31_s25, 512, %s33_s29, [#allocation6], %s280_s26, %s280_s26, %s281_s27  }
   0x9   :  { %273 = dma.done.wait [#allocation3], 256  }
   0xa   :  { %274 = vsyncadd [#allocation3], 4294967040 }
   0xb   :  { %275 = dma.done.wait [#allocation6], 512  }
   0xc   :  { %276 = vsyncadd [#allocation6], 4294966784  ;;  %v58_v0 = vld [vmem:[#allocation5 + $0x18] sm:$0xff]  ;;  %v57_v1 = vld [vmem:[#allocation5 + $0x10] sm:$0xff]  ;;  %vm63_vm0 = vcmask 261120   ;;  %v283_v15 = vmov 32.0  }
   0xd   :  { %82 = vmatpush.msra.mxu0 %v58_v0  ;;  %182 = vmatpush.msra.mxu1 %v58_v0  ;;  %v56_v2 = vld [vmem:[#allocation5 + $0x8] sm:$0xff]  ;;  %v55_v3 = vld [vmem:[#allocation5] sm:$0xff]  ;;  %v53_v4 = vld [vmem:[#allocation2] sm:$0xff]  ;;  %195 = vrcp.f32 %v283_v15  ;;  %s166_s11 = sshll.u32 %s355_s5, 4  ;;  %s167_s11 = int_to_ptr.hbm [resolvable:$true] %s166_s11 }
   0xe   :  { %v54_v5 = vld [vmem:[#allocation2 + $0x8] sm:$0xff]  ;;  %v192_v6 = vld [vmem:[%s352_s2] ss:$0 sm:$0xff] }
   0xf   :  { %83 = vmatpush.msra.mxu0 %v57_v1  ;;  %183 = vmatpush.msra.mxu1 %v57_v1  ;;  %v193_v46 = vld [vmem:[%s353_s3] ss:$0 sm:$0xff]  ;;  %s284_s3 = smov [#allocation7]  }
  0x10   :  { %v194_v50 = vld [vmem:[%s354_s4] ss:$0 sm:$0xff]  ;;  %s164_s8 = sshll.u32 %s284_s3, 4  ;;  %s165_s8 = int_to_ptr.vmem [resolvable:$true] %s164_s8 }
  0x11   :  { %84 = vmatpush.msra.mxu0 %v56_v2  ;;  %184 = vmatpush.msra.mxu1 %v56_v2 }
  0x13   :  { %85 = vmatpush.msra.mxu0 %v55_v3  ;;  %185 = vmatpush.msra.mxu1 %v55_v3  ;;  %v196_v16 = vpop.eup %195 }
  0x14   :  { %180 = vmatmul.msk.f32.vlgmr.msra.gmra.mxu0 %vm63_vm0, %v53_v4  ;;  %181 = vmatmul.msk.f32.vlgmr.msra.gmra.mxu1 %vm63_vm0, %v54_v5  ;;  %v102_v17 = vmul.f32 32.0, %v196_v16  ;;  %vm106_vm1 = vweird.f32 %v196_v16 }
  0x16   :  { %v103_v18 = vsub.f32 1.0, %v102_v17 }
  0x18   :  { %v104_v19 = vmul.f32 %v196_v16, %v103_v18 }
  0x1a   :  { %v105_v20 = vadd.f32 %v196_v16, %v104_v19 }
  0x1c   :  { %v107_v21 = vsel %vm106_vm1, %v196_v16, %v105_v20 }
  0x91   :  { %v87_v7 = vpop.f32.mrf.mxu0  ;;  %v90_v8 = vpop.f32.mrf.mxu1 }
  0x92   :  { %v88_v9 = vadd.f32 %v192_v6, %v87_v7  ;;  %v91_v11 = vadd.f32 %v192_v6, %v90_v8 }
  0x94   :  { %v93_v10 = vmax.f32 %v88_v9, 0.0  ;;  %v94_v13 = vmax.f32 %v91_v11, 0.0 }
  0x96   :  { %v95_v12 = vsel %vm63_vm0, %v93_v10, 0.0  ;;  %v98_v14 = vsel %vm63_vm0, %v94_v13, 0.0 }
  0x97   :  { %96 = vadd.xlane.f32.xlu0 %v95_v12 }
  0x9f   :  { %99 = vadd.xlane.f32.xlu0 %v98_v14 }
 0x10a   :  { %v97_v22 = vpop.xlane.xlu0 %96 }
 0x10b   :  { %v108_v23 = vmul.f32 %v107_v21, %v97_v22 }
 0x10d   :  { %v110_v24 = vsub.f32 %v93_v10, %v108_v23 }
 0x10f   :  { %v112_v25 = vmul.f32 %v110_v24, %v110_v24 }
 0x111   :  { %v114_v26 = vsel %vm63_vm0, %v112_v25, 0.0 }
 0x112   :  { %115 = vadd.xlane.f32.xlu1 %v114_v26  ;;  %v100_v27 = vpop.xlane.xlu0 %99 }
 0x113   :  { %v109_v28 = vmul.f32 %v107_v21, %v100_v27 }
 0x115   :  { %v111_v29 = vsub.f32 %v94_v13, %v109_v28 }
 0x117   :  { %v113_v30 = vmul.f32 %v111_v29, %v111_v29 }
 0x119   :  { %v117_v31 = vsel %vm63_vm0, %v113_v30, 0.0 }
 0x11a   :  { %118 = vadd.xlane.f32.xlu1 %v117_v31 }
 0x185   :  { %v116_v32 = vpop.xlane.xlu1 %115 }
 0x186   :  { %v120_v33 = vmul.f32 %v116_v32, %v107_v21 }
 0x188   :  { %v122_v34 = vadd.f32 1e-05, %v120_v33 }
 0x18a   :  { %197 = vrsqrt.f32 %v122_v34  ;;  %vm130_vm3 = vweird.f32 %v122_v34 }
 0x18d   :  { %v119_v35 = vpop.xlane.xlu1 %118 }
 0x18e   :  { %v121_v36 = vmul.f32 %v119_v35, %v107_v21 }
 0x190   :  { %v198_v37 = vpop.eup %197  ;;  %v123_v38 = vadd.f32 1e-05, %v121_v36 }
 0x191   :  { %v125_v39 = vmul.f32 %v198_v37, %v122_v34  ;;  %vm131_vm2 = vweird.f32 %v198_v37 }
 0x192   :  { %199 = vrsqrt.f32 %v123_v38  ;;  %vm132_vm4 = vmor %vm130_vm3, %vm131_vm2  ;;  %vm140_vm6 = vweird.f32 %v123_v38 }
 0x193   :  { %v126_v40 = vmul.f32 %v198_v37, %v125_v39 }
 0x195   :  { %v127_v41 = vmul.f32 0.5, %v126_v40 }
 0x197   :  { %v128_v42 = vsub.f32 1.5, %v127_v41 }
 0x198   :  { %v200_v43 = vpop.eup %199 }
 0x199   :  { %v129_v44 = vmul.f32 %v198_v37, %v128_v42  ;;  %v135_v45 = vmul.f32 %v200_v43, %v123_v38  ;;  %vm141_vm5 = vweird.f32 %v200_v43 }
 0x19a   :  { %vm142_vm7 = vmor %vm140_vm6, %vm141_vm5 }
 0x19b   :  { %v133_v47 = vsel %vm132_vm4, %v198_v37, %v129_v44  ;;  %v136_v48 = vmul.f32 %v200_v43, %v135_v45 }
 0x19c   :  { %v144_v49 = vmul.f32 %v133_v47, %v110_v24 }
 0x19d   :  { %v137_v51 = vmul.f32 0.5, %v136_v48 }
 0x19e   :  { %v150_v52 = vmul.f32 %v193_v46, %v144_v49 }
 0x19f   :  { %v138_v53 = vsub.f32 1.5, %v137_v51 }
 0x1a0   :  { %v156_v54 = vadd.f32 %v194_v50, %v150_v52 }
 0x1a1   :  { %v139_v55 = vmul.f32 %v200_v43, %v138_v53 }
 0x1a2   :  { %158 = vst.msk [vmem:[#allocation7] sm:$0xff] %vm63_vm0, %v156_v54 }
 0x1a3   :  { %v143_v56 = vsel %vm142_vm7, %v200_v43, %v139_v55 }
 0x1a4   :  { %v145_v57 = vmul.f32 %v143_v56, %v111_v29 }
 0x1a6   :  { %v151_v58 = vmul.f32 %v193_v46, %v145_v57 }
 0x1a8   :  { %v157_v59 = vadd.f32 %v194_v50, %v151_v58 }
 0x1aa   :  { %159 = vst.msk [vmem:[#allocation7 + $0x8] sm:$0xff] %vm63_vm0, %v157_v59 }
 0x1ab   :  { %172 = dma.vmem_to_hbm [thread:$0]  %s165_s8, 256, %s167_s11, [#allocation4], %s280_s26, %s280_s26, %s281_s27  }
 0x1ac   :  { %277 = dma.done.wait [#allocation4], 256  }
 0x1ad   :  { %278 = vsyncadd [#allocation4], 4294967040 }
 0x1ae   :  { %177 = vsyncpa [#allocation3], 1 }
 0x1af   :  { %178 = vsyncpa [#allocation6], 1 }
 0x1b0   :  { %179 = vsyncpa [#allocation4], 1 }

</bundles_post_ra>
